<compile_context>
chip_gen: v6e
topology: v6e:2x2x1
jax: 0.10.0
libtpu: 0.0.40
codegen_flags: <defaults>
</compile_context>

<pallas_src>
import functools

import jax
import jax.numpy as jnp
import numpy as np
from jax.experimental import pallas as pl
from jax.experimental.pallas import tpu as pltpu


BN_EPS = 1e-5
GATE_EPS = 1e-6


def _round_up(v, m):
    return (v + m - 1) // m * m


def _alignn_kernel(
    x_ref,            # [N_pad, D]   f32   node features (VMEM resident)
    y_ref,            # [E_TILE, D]  bf16  edge-feature tile
    idx_ref,          # [E_TILE, 2]  int32 packed (src, dst) indices
    w_blk_ref,        # [D, 8F]      f32   fused gather-table weights
    b_blk_ref,        # [1, 8F]      f32   fused gather-table biases
    w_eg2_ref,        # [D, 2F]      bf16  duplicated edge_gate weight [Weg | Weg]
    b_eg2_ref,        # [1, 2F]      f32   duplicated edge_gate bias
    w_su_ref,         # [D, F]       f32   src_update weight
    b_su_ref,         # [1, F]       f32   src_update bias
    gamma_ref,        # [1, F]       f32   bn_nodes weight
    beta_ref,         # [1, F]       f32   bn_nodes bias
    x_out_ref,        # [N_pad, F]   f32   output
    gproj_ref,        # scratch [2*N_pad, 4F] bf16 gather table (src rows, dst rows)
    acc_ref,          # scratch [N_pad, 2F]   f32  [sum_sigma_h | sum_sigma]
    *, n_real,
):
    f32 = jnp.float32
    bf16 = jnp.bfloat16
    F = w_su_ref.shape[1]
    e_tile = y_ref.shape[0]
    n_pad = x_ref.shape[0]
    t = pl.program_id(0)
    last = pl.num_programs(0) - 1

    # ---- first edge tile only: build the bf16 gather table + zero the accumulator.
    @pl.when(t == 0)
    def _init():
        proj = (
            jnp.dot(x_ref[...], w_blk_ref[...], preferred_element_type=f32)
            + b_blk_ref[...]
        )                                                   # [N_pad, 8F], lane dense
        gproj_ref[0:n_pad, :] = proj[:, : 4 * F].astype(bf16)   # src-row block
        gproj_ref[n_pad:, :] = proj[:, 4 * F :].astype(bf16)    # dst-row block
        acc_ref[...] = jnp.zeros_like(acc_ref)

    # ---- per edge tile ------------------------------------------------------
    # Edge gate, duplicated to 2F lanes so m2 = [m | m] falls out below.
    eg2 = (
        jnp.dot(y_ref[...], w_eg2_ref[...], preferred_element_type=f32)
        + b_eg2_ref[...]
    )                                                       # [E_TILE, 2F] f32

    # Lane-concatenated one-hot [oh_src | oh_dst], built on the VPU from indices.
    # Padded edges carry sentinel index n_pad -> no match in either half -> inert.
    src_ids = idx_ref[:, 0:1]                               # [E_TILE, 1] int32
    dst_ids = idx_ref[:, 1:2]                               # [E_TILE, 1] int32
    col2 = jax.lax.broadcasted_iota(jnp.int32, (e_tile, 2 * n_pad), 1)
    tgt = jnp.where(col2 < n_pad, src_ids, dst_ids + n_pad)
    oh_cat = jnp.where(col2 == tgt, 1.0, 0.0).astype(bf16)  # [E_TILE, 2*N_pad]

    # ONE fused gather matmul (bf16 MXU, f32 accumulate).  Column layout of the
    # gather table makes  e_src[src] + e_dst[dst]  fall out of the contraction:
    #   gath = [ m_nodes | m_nodes | Bh[src] | valid ]      (4F = 128 lanes)
    gath = jnp.dot(oh_cat, gproj_ref[...], preferred_element_type=f32)

    m2 = gath[:, : 2 * F] + eg2                             # [m | m]
    sigma2 = jax.nn.sigmoid(m2)                             # f32 elementwise (v5e safe)
    contrib = (sigma2 * gath[:, 2 * F :]).astype(bf16)      # [sigma*Bh | sigma]

    # Scatter-add into destination nodes: contract the edge axis of the dst one-hot.
    col_n = jax.lax.broadcasted_iota(jnp.int32, (e_tile, n_pad), 1)
    oh_dst = jnp.where(col_n == dst_ids, 1.0, 0.0).astype(bf16)   # [E_TILE, N_pad]
    acc_ref[...] += jax.lax.dot_general(
        oh_dst, contrib,
        dimension_numbers=(((0,), (0,)), ((), ())),
        preferred_element_type=f32,
    )                                                       # [N_pad, 2F]

    # ---- last edge tile only: gate normalization + BN + relu6 + residual.
    @pl.when(t == last)
    def _finalize():
        acc = acc_ref[...]
        sum_sigma_h = acc[:, :F]
        sum_sigma = acc[:, F:]
        h = sum_sigma_h * pl.reciprocal(sum_sigma + GATE_EPS, approx=True)

        sx = (
            jnp.dot(x_ref[...], w_su_ref[...], preferred_element_type=f32)
            + b_su_ref[...]
        )
        pre = sx + h                                        # [N_pad, F]

        # BatchNorm1d (training-mode batch statistics) over the real node rows only.
        row = jax.lax.broadcasted_iota(jnp.int32, (n_pad, 1), 0)
        mask = (row < n_real).astype(f32)
        inv_n = 1.0 / float(n_real)
        mean = jnp.sum(pre * mask, axis=0, keepdims=True) * inv_n
        diff = (pre - mean) * mask
        var = jnp.sum(diff * diff, axis=0, keepdims=True) * inv_n
        xn = (pre - mean) * jax.lax.rsqrt(var + BN_EPS)
        bn = xn * gamma_ref[...] + beta_ref[...]
        x_out_ref[...] = x_ref[...] + jnp.clip(bn, 0.0, 6.0)   # relu6 + residual


def alignn_conv_no_angle(x, y, src_idx, dst_idx, params, *, edge_tile=256):
    """ALIGNNConvNoAngle.forward(g, lg, x, y) -> (x_new, y), one Pallas kernel."""
    n, d = x.shape
    e = y.shape[0]
    f = params["w_sg"].shape[1]
    assert d == f, "residual add requires in_features == out_features"

    n_pad = _round_up(max(n, 16), 16)                 # 16: bf16 sublane tile alignment
    edge_tile = max(16, min(edge_tile, _round_up(e, 16)))
    e_pad = _round_up(e, edge_tile)
    n_tiles = e_pad // edge_tile

    x_p = jnp.zeros((n_pad, d), jnp.float32).at[:n].set(x.astype(jnp.float32))
    y_p = jnp.zeros((e_pad, d), jnp.bfloat16).at[:e].set(y.astype(jnp.bfloat16))
    # Sentinel index n_pad (out of range) -> zero one-hot row -> padded edges inert.
    idx = jnp.full((e_pad, 2), n_pad, jnp.int32)
    idx = idx.at[:e, 0].set(src_idx.astype(jnp.int32))
    idx = idx.at[:e, 1].set(dst_idx.astype(jnp.int32))

    zf = jnp.zeros((d, f), jnp.float32)
    zb = jnp.zeros((1, f), jnp.float32)
    ob = jnp.ones((1, f), jnp.float32)
    # Gather-table projection: src-row block [Wsg|Wsg|Wdu|0], dst-row block [Wdg|Wdg|0|0].
    w_blk = jnp.concatenate(
        [params["w_sg"], params["w_sg"], params["w_du"], zf,
         params["w_dg"], params["w_dg"], zf, zf], axis=1)            # [D, 8F]
    b_blk = jnp.concatenate(
        [params["b_sg"], params["b_sg"], params["b_du"], ob,
         params["b_dg"], params["b_dg"], zb, zb], axis=1)            # [1, 8F]
    w_eg2 = jnp.concatenate([params["w_eg"], params["w_eg"]], axis=1).astype(jnp.bfloat16)
    b_eg2 = jnp.concatenate([params["b_eg"], params["b_eg"]], axis=1)

    kernel = functools.partial(_alignn_kernel, n_real=n)

    flops = (
        2 * n_pad * d * 8 * f                 # gather-table projection (once)
        + 2 * n_pad * d * f                   # src_update (once, finalize)
        + 2 * e_pad * d * 2 * f               # edge gate
        + 2 * e_pad * (2 * n_pad) * 4 * f     # fused gather
        + 2 * e_pad * n_pad * 2 * f           # scatter-sum
    )
    bytes_accessed = (
        4 * (x_p.size + w_blk.size + b_blk.size + b_eg2.size + 4 * f + n_pad * f)
        + 2 * (y_p.size + w_eg2.size)
        + 4 * idx.size
    )

    resident = lambda t: (0, 0)
    edge_tiled = lambda t: (t, 0)

    grid_spec = pltpu.PrefetchScalarGridSpec(
        num_scalar_prefetch=0,
        grid=(n_tiles,),
        in_specs=[
            pl.BlockSpec((n_pad, d), resident),           # x (VMEM-resident)
            pl.BlockSpec((edge_tile, d), edge_tiled),     # y tile (bf16)
            pl.BlockSpec((edge_tile, 2), edge_tiled),     # packed (src,dst) indices
            pl.BlockSpec((d, 8 * f), resident),           # gather-table weights
            pl.BlockSpec((1, 8 * f), resident),           # gather-table biases
            pl.BlockSpec((d, 2 * f), resident),           # duplicated edge_gate weight
            pl.BlockSpec((1, 2 * f), resident),           # duplicated edge_gate bias
            pl.BlockSpec((d, f), resident),               # src_update weight
            pl.BlockSpec((1, f), resident),               # src_update bias
            pl.BlockSpec((1, f), resident),               # bn gamma
            pl.BlockSpec((1, f), resident),               # bn beta
        ],
        out_specs=pl.BlockSpec((n_pad, f), resident),
        scratch_shapes=[
            pltpu.VMEM((2 * n_pad, 4 * f), jnp.bfloat16),  # gather table
            pltpu.VMEM((n_pad, 2 * f), jnp.float32),       # [sum_sigma_h | sum_sigma]
        ],
    )

    x_new = pl.pallas_call(
        kernel,
        out_shape=jax.ShapeDtypeStruct((n_pad, f), jnp.float32),
        grid_spec=grid_spec,
        compiler_params=pltpu.CompilerParams(
            dimension_semantics=("arbitrary",),            # edge tiles accumulate
            vmem_limit_bytes=32 * 1024 * 1024,             # safe on v5e/v6e/v7x
        ),
        cost_estimate=pl.CostEstimate(
            flops=flops, transcendentals=2 * e_pad * f, bytes_accessed=bytes_accessed),
    )(x_p, y_p, idx, w_blk, b_blk, w_eg2, b_eg2,
      params["w_su"], params["b_su"], params["gamma"], params["beta"])

    return x_new[:n], y


def _init_params(key, d_in, d_out):
    """Deterministic synthetic parameters (Linear weights stored as [D_in, D_out])."""
    ks = jax.random.split(key, 10)
    scale = 1.0 / np.sqrt(d_in)

    def lin(kw, kb):
        w = jax.random.uniform(kw, (d_in, d_out), jnp.float32, -scale, scale)
        b = jax.random.uniform(kb, (1, d_out), jnp.float32, -scale, scale)
        return w, b

    w_sg, b_sg = lin(ks[0], ks[1])
    w_dg, b_dg = lin(ks[2], ks[3])
    w_eg, b_eg = lin(ks[4], ks[5])
    w_du, b_du = lin(ks[6], ks[7])
    w_su, b_su = lin(ks[8], ks[9])
    return dict(
        w_sg=w_sg, b_sg=b_sg, w_dg=w_dg, b_dg=b_dg,
        w_eg=w_eg, b_eg=b_eg, w_du=w_du, b_du=b_du,
        w_su=w_su, b_su=b_su,
        gamma=jnp.ones((1, d_out), jnp.float32),   # PyTorch BN weight init
        beta=jnp.zeros((1, d_out), jnp.float32),   # PyTorch BN bias init
    )


def _reference(x, y, src_idx, dst_idx, p):
    """Pure-JAX reference of the same forward (in-script sanity check)."""
    e_src = x @ p["w_sg"] + p["b_sg"]
    e_dst = x @ p["w_dg"] + p["b_dg"]
    bh = x @ p["w_du"] + p["b_du"]
    sx = x @ p["w_su"] + p["b_su"]
    eg = y @ p["w_eg"] + p["b_eg"]
    m = e_src[src_idx] + e_dst[dst_idx] + eg
    sigma = jax.nn.sigmoid(m)
    n = x.shape[0]
    sum_sigma_h = jax.ops.segment_sum(sigma * bh[src_idx], dst_idx, num_segments=n)
    sum_sigma = jax.ops.segment_sum(sigma, dst_idx, num_segments=n)
    h = sum_sigma_h / (sum_sigma + GATE_EPS)
    pre = sx + h
    mean = pre.mean(0, keepdims=True)
    var = ((pre - mean) ** 2).mean(0, keepdims=True)
    bn = (pre - mean) * jax.lax.rsqrt(var + BN_EPS) * p["gamma"] + p["beta"]
    return x + jnp.clip(bn, 0.0, 6.0), y


if __name__ == "__main__":
    # Small shapes; residual in EdgeGatedGraphConv requires in_features == out_features.
    N_NODES, N_EDGES, D = 24, 200, 32

    key = jax.random.PRNGKey(0)
    k_x, k_y, k_src, k_dst, k_p = jax.random.split(key, 5)

    x = jax.random.normal(k_x, (N_NODES, D), jnp.float32)   # node features
    y = jax.random.normal(k_y, (N_EDGES, D), jnp.float32)   # edge features
    src_idx = jax.random.randint(k_src, (N_EDGES,), 0, N_NODES)
    dst_idx = jax.random.randint(k_dst, (N_EDGES,), 0, N_NODES)
    params = _init_params(k_p, D, D)

    # edge_tile=64 keeps the demo tiny while still exercising the multi-tile
    # accumulate -> finalize path (4 grid steps); production default is 256.
    x_new, y_out = alignn_conv_no_angle(x, y, src_idx, dst_idx, params, edge_tile=64)
    jax.block_until_ready((x_new, y_out))

    x_ref, y_ref = _reference(x, y, src_idx, dst_idx, params)
    # bf16 MXU operands (f32 accumulation) + approx reciprocal: typical error ~1e-3,
    # a few e-2 worst case after the BatchNorm renormalization -> 4e-2 tolerance.
    np.testing.assert_allclose(np.asarray(x_new), np.asarray(x_ref), rtol=4e-2, atol=4e-2)
    np.testing.assert_allclose(np.asarray(y_out), np.asarray(y_ref), rtol=0, atol=0)

    print("KERNEL_OK")
</pallas_src>

<mosaic_0001>
module attributes {stable_mosaic.version = 11 : i64} {
  func.func @_alignn_kernel(%arg0: i32, %arg1: memref<32x32xf32, #tpu.memory_space<vmem>>, %arg2: memref<64x32xbf16, #tpu.memory_space<vmem>>, %arg3: memref<64x2xi32, #tpu.memory_space<vmem>>, %arg4: memref<32x256xf32, #tpu.memory_space<vmem>>, %arg5: memref<1x256xf32, #tpu.memory_space<vmem>>, %arg6: memref<32x64xbf16, #tpu.memory_space<vmem>>, %arg7: memref<1x64xf32, #tpu.memory_space<vmem>>, %arg8: memref<32x32xf32, #tpu.memory_space<vmem>>, %arg9: memref<1x32xf32, #tpu.memory_space<vmem>>, %arg10: memref<1x32xf32, #tpu.memory_space<vmem>>, %arg11: memref<1x32xf32, #tpu.memory_space<vmem>>, %arg12: memref<32x32xf32, #tpu.memory_space<vmem>>, %arg13: memref<64x128xbf16, #tpu.memory_space<vmem>>, %arg14: memref<32x64xf32, #tpu.memory_space<vmem>>) attributes {dimension_semantics = [#tpu.dimension_semantics<arbitrary>], iteration_bounds = array<i64: 4>, scalar_prefetch = 0 : i64, scratch_operands = 2 : i64, tpu.core_type = #tpu.core_type<tc>, window_params = [{pipeline_mode = #tpu.pipeline_mode<synchronous>, transform_indices = @transform_0, window_bounds = array<i64: 32, 32>}, {transform_indices = @transform_1, window_bounds = array<i64: 64, 32>}, {transform_indices = @transform_2, window_bounds = array<i64: 64, 2>}, {pipeline_mode = #tpu.pipeline_mode<synchronous>, transform_indices = @transform_3, window_bounds = array<i64: 32, 256>}, {pipeline_mode = #tpu.pipeline_mode<synchronous>, transform_indices = @transform_4, window_bounds = array<i64: 1, 256>}, {pipeline_mode = #tpu.pipeline_mode<synchronous>, transform_indices = @transform_5, window_bounds = array<i64: 32, 64>}, {pipeline_mode = #tpu.pipeline_mode<synchronous>, transform_indices = @transform_6, window_bounds = array<i64: 1, 64>}, {pipeline_mode = #tpu.pipeline_mode<synchronous>, transform_indices = @transform_7, window_bounds = array<i64: 32, 32>}, {pipeline_mode = #tpu.pipeline_mode<synchronous>, transform_indices = @transform_8, window_bounds = array<i64: 1, 32>}, {pipeline_mode = #tpu.pipeline_mode<synchronous>, transform_indices = @transform_9, window_bounds = array<i64: 1, 32>}, {pipeline_mode = #tpu.pipeline_mode<synchronous>, transform_indices = @transform_10, window_bounds = array<i64: 1, 32>}, {pipeline_mode = #tpu.pipeline_mode<synchronous>, transform_indices = @transform_11, window_bounds = array<i64: 32, 32>}]} {
    %c0_i32 = arith.constant 0 : i32
    %0 = arith.cmpi eq, %arg0, %c0_i32 : i32
    %1 = arith.extui %0 : i1 to i32
    %c0_i32_0 = arith.constant 0 : i32
    %2 = arith.cmpi ne, %1, %c0_i32_0 : i32
    scf.if %2 {
      %c0_24 = arith.constant 0 : index
      %c0_25 = arith.constant 0 : index
      %52 = vector.load %arg1[%c0_24, %c0_25] : memref<32x32xf32, #tpu.memory_space<vmem>>, vector<32x32xf32>
      %c0_26 = arith.constant 0 : index
      %c0_27 = arith.constant 0 : index
      %53 = vector.load %arg4[%c0_26, %c0_27] : memref<32x256xf32, #tpu.memory_space<vmem>>, vector<32x256xf32>
      %cst_28 = arith.constant dense<0.000000e+00> : vector<32x256xf32>
      %54 = tpu.matmul %52, %53, %cst_28 {dimension_numbers = #tpu.dot_dimension_numbers<[1], [0], [0], [1], [0, 0, 1, 1], [], []>} : vector<32x32xf32>, vector<32x256xf32>, vector<32x256xf32> -> vector<32x256xf32>
      %c0_29 = arith.constant 0 : index
      %c0_30 = arith.constant 0 : index
      %55 = vector.load %arg5[%c0_29, %c0_30] : memref<1x256xf32, #tpu.memory_space<vmem>>, vector<1x256xf32>
      %56 = vector.broadcast %55 : vector<1x256xf32> to vector<32x256xf32>
      %57 = arith.addf %54, %56 : vector<32x256xf32>
      %58 = vector.extract_strided_slice %57 {offsets = [0, 0], sizes = [32, 128], strides = [1, 1]} : vector<32x256xf32> to vector<32x128xf32>
      %59 = arith.truncf %58 : vector<32x128xf32> to vector<32x128xbf16>
      %c0_31 = arith.constant 0 : index
      %c0_32 = arith.constant 0 : index
      %60 = vector.load %arg13[%c0_31, %c0_32] : memref<64x128xbf16, #tpu.memory_space<vmem>>, vector<32x128xbf16>
      tpu.vector_store %arg13[%c0_31, %c0_32], %59 {strides = array<i32>} : memref<64x128xbf16, #tpu.memory_space<vmem>>, vector<32x128xbf16>,
      %61 = vector.extract_strided_slice %57 {offsets = [0, 128], sizes = [32, 128], strides = [1, 1]} : vector<32x256xf32> to vector<32x128xf32>
      %62 = arith.truncf %61 : vector<32x128xf32> to vector<32x128xbf16>
      %c32 = arith.constant 32 : index
      %c0_33 = arith.constant 0 : index
      %63 = vector.load %arg13[%c32, %c0_33] : memref<64x128xbf16, #tpu.memory_space<vmem>>, vector<32x128xbf16>
      tpu.vector_store %arg13[%c32, %c0_33], %62 {strides = array<i32>} : memref<64x128xbf16, #tpu.memory_space<vmem>>, vector<32x128xbf16>,
      %cst_34 = arith.constant 0.000000e+00 : f32
      %64 = vector.broadcast %cst_34 : f32 to vector<32x64xf32>
      %c0_35 = arith.constant 0 : index
      %c0_36 = arith.constant 0 : index
      %65 = vector.load %arg14[%c0_35, %c0_36] : memref<32x64xf32, #tpu.memory_space<vmem>>, vector<32x64xf32>
      tpu.vector_store %arg14[%c0_35, %c0_36], %64 {strides = array<i32>} : memref<32x64xf32, #tpu.memory_space<vmem>>, vector<32x64xf32>,
    } else {
    }
    %c0 = arith.constant 0 : index
    %c0_1 = arith.constant 0 : index
    %3 = vector.load %arg2[%c0, %c0_1] : memref<64x32xbf16, #tpu.memory_space<vmem>>, vector<64x32xbf16>
    %c0_2 = arith.constant 0 : index
    %c0_3 = arith.constant 0 : index
    %4 = vector.load %arg6[%c0_2, %c0_3] : memref<32x64xbf16, #tpu.memory_space<vmem>>, vector<32x64xbf16>
    %cst = arith.constant dense<0.000000e+00> : vector<64x64xf32>
    %5 = tpu.matmul %3, %4, %cst {dimension_numbers = #tpu.dot_dimension_numbers<[1], [0], [0], [1], [0, 0, 1, 1], [], []>} : vector<64x32xbf16>, vector<32x64xbf16>, vector<64x64xf32> -> vector<64x64xf32>
    %c0_4 = arith.constant 0 : index
    %c0_5 = arith.constant 0 : index
    %6 = vector.load %arg7[%c0_4, %c0_5] : memref<1x64xf32, #tpu.memory_space<vmem>>, vector<1x64xf32>
    %7 = vector.broadcast %6 : vector<1x64xf32> to vector<64x64xf32>
    %8 = arith.addf %5, %7 : vector<64x64xf32>
    %c0_6 = arith.constant 0 : index
    %c0_7 = arith.constant 0 : index
    %9 = vector.load %arg3[%c0_6, %c0_7] : memref<64x2xi32, #tpu.memory_space<vmem>>, vector<64x1xi32>
    %c0_8 = arith.constant 0 : index
    %c1 = arith.constant 1 : index
    %10 = vector.load %arg3[%c0_8, %c1] : memref<64x2xi32, #tpu.memory_space<vmem>>, vector<64x1xi32>
    %11 = tpu.iota {dimensions = array<i32: 1>} : vector<64x64xi32>
    %c32_i32 = arith.constant 32 : i32
    %12 = vector.broadcast %c32_i32 : i32 to vector<64x64xi32>
    %13 = arith.cmpi slt, %11, %12 : vector<64x64xi32>
    %c32_i32_9 = arith.constant 32 : i32
    %14 = vector.broadcast %c32_i32_9 : i32 to vector<64x1xi32>
    %15 = arith.addi %10, %14 : vector<64x1xi32>
    %16 = vector.shape_cast %9 : vector<64x1xi32> to vector<64x1xi32>
    %17 = vector.broadcast %16 : vector<64x1xi32> to vector<64x64xi32>
    %18 = vector.shape_cast %15 : vector<64x1xi32> to vector<64x1xi32>
    %19 = vector.broadcast %18 : vector<64x1xi32> to vector<64x64xi32>
    %20 = arith.select %13, %17, %19 : vector<64x64xi1>, vector<64x64xi32>
    %21 = arith.cmpi eq, %11, %20 : vector<64x64xi32>
    %cst_10 = arith.constant 1.000000e+00 : f32
    %cst_11 = arith.constant 0.000000e+00 : f32
    %22 = vector.broadcast %cst_10 : f32 to vector<64x64xf32>
    %23 = vector.broadcast %cst_11 : f32 to vector<64x64xf32>
    %24 = arith.select %21, %22, %23 : vector<64x64xi1>, vector<64x64xf32>
    %25 = arith.truncf %24 : vector<64x64xf32> to vector<64x64xbf16>
    %c0_12 = arith.constant 0 : index
    %c0_13 = arith.constant 0 : index
    %26 = vector.load %arg13[%c0_12, %c0_13] : memref<64x128xbf16, #tpu.memory_space<vmem>>, vector<64x128xbf16>
    %cst_14 = arith.constant dense<0.000000e+00> : vector<64x128xf32>
    %27 = tpu.matmul %25, %26, %cst_14 {dimension_numbers = #tpu.dot_dimension_numbers<[1], [0], [0], [1], [0, 0, 1, 1], [], []>} : vector<64x64xbf16>, vector<64x128xbf16>, vector<64x128xf32> -> vector<64x128xf32>
    %28 = vector.extract_strided_slice %27 {offsets = [0, 0], sizes = [64, 64], strides = [1, 1]} : vector<64x128xf32> to vector<64x64xf32>
    %29 = arith.addf %28, %8 : vector<64x64xf32>
    %30 = arith.negf %29 : vector<64x64xf32>
    %31 = math.exp %30 : vector<64x64xf32>
    %cst_15 = arith.constant 1.000000e+00 : f32
    %32 = vector.broadcast %cst_15 : f32 to vector<64x64xf32>
    %33 = arith.addf %32, %31 : vector<64x64xf32>
    %34 = arith.divf %32, %33 : vector<64x64xf32>
    %35 = vector.extract_strided_slice %27 {offsets = [0, 64], sizes = [64, 64], strides = [1, 1]} : vector<64x128xf32> to vector<64x64xf32>
    %36 = arith.mulf %34, %35 : vector<64x64xf32>
    %37 = arith.truncf %36 : vector<64x64xf32> to vector<64x64xbf16>
    %38 = tpu.iota {dimensions = array<i32: 1>} : vector<64x32xi32>
    %39 = vector.broadcast %10 : vector<64x1xi32> to vector<64x32xi32>
    %40 = arith.cmpi eq, %38, %39 : vector<64x32xi32>
    %cst_16 = arith.constant 1.000000e+00 : f32
    %cst_17 = arith.constant 0.000000e+00 : f32
    %41 = vector.broadcast %cst_16 : f32 to vector<64x32xf32>
    %42 = vector.broadcast %cst_17 : f32 to vector<64x32xf32>
    %43 = arith.select %40, %41, %42 : vector<64x32xi1>, vector<64x32xf32>
    %44 = arith.truncf %43 : vector<64x32xf32> to vector<64x32xbf16>
    %c0_18 = arith.constant 0 : index
    %c0_19 = arith.constant 0 : index
    %45 = vector.load %arg14[%c0_18, %c0_19] : memref<32x64xf32, #tpu.memory_space<vmem>>, vector<32x64xf32>
    %cst_20 = arith.constant dense<0.000000e+00> : vector<32x64xf32>
    %46 = tpu.matmul %44, %37, %cst_20 {dimension_numbers = #tpu.dot_dimension_numbers<[0], [0], [1], [1], [0, 1, 1, 1], [], []>} : vector<64x32xbf16>, vector<64x64xbf16>, vector<32x64xf32> -> vector<32x64xf32>
    %47 = arith.addf %45, %46 : vector<32x64xf32>
    %c0_21 = arith.constant 0 : index
    %c0_22 = arith.constant 0 : index
    %48 = vector.load %arg14[%c0_21, %c0_22] : memref<32x64xf32, #tpu.memory_space<vmem>>, vector<32x64xf32>
    tpu.vector_store %arg14[%c0_21, %c0_22], %47 {strides = array<i32>} : memref<32x64xf32, #tpu.memory_space<vmem>>, vector<32x64xf32>,
    %c3_i32 = arith.constant 3 : i32
    %49 = arith.cmpi eq, %arg0, %c3_i32 : i32
    %50 = arith.extui %49 : i1 to i32
    %c0_i32_23 = arith.constant 0 : i32
    %51 = arith.cmpi ne, %50, %c0_i32_23 : i32
    scf.if %51 {
      %c0_24 = arith.constant 0 : index
      %c0_25 = arith.constant 0 : index
      %52 = vector.load %arg14[%c0_24, %c0_25] : memref<32x64xf32, #tpu.memory_space<vmem>>, vector<32x64xf32>
      %53 = vector.extract_strided_slice %52 {offsets = [0, 0], sizes = [32, 32], strides = [1, 1]} : vector<32x64xf32> to vector<32x32xf32>
      %54 = vector.extract_strided_slice %52 {offsets = [0, 32], sizes = [32, 32], strides = [1, 1]} : vector<32x64xf32> to vector<32x32xf32>
      %cst_26 = arith.constant 9.99999997E-7 : f32
      %55 = vector.broadcast %cst_26 : f32 to vector<32x32xf32>
      %56 = arith.addf %54, %55 : vector<32x32xf32>
      %57 = tpu.reciprocal %56 {approx = true} : vector<32x32xf32> -> vector<32x32xf32>
      %58 = arith.mulf %53, %57 : vector<32x32xf32>
      %c0_27 = arith.constant 0 : index
      %c0_28 = arith.constant 0 : index
      %59 = vector.load %arg1[%c0_27, %c0_28] : memref<32x32xf32, #tpu.memory_space<vmem>>, vector<32x32xf32>
      %c0_29 = arith.constant 0 : index
      %c0_30 = arith.constant 0 : index
      %60 = vector.load %arg8[%c0_29, %c0_30] : memref<32x32xf32, #tpu.memory_space<vmem>>, vector<32x32xf32>
      %cst_31 = arith.constant dense<0.000000e+00> : vector<32x32xf32>
      %61 = tpu.matmul %59, %60, %cst_31 {dimension_numbers = #tpu.dot_dimension_numbers<[1], [0], [0], [1], [0, 0, 1, 1], [], []>} : vector<32x32xf32>, vector<32x32xf32>, vector<32x32xf32> -> vector<32x32xf32>
      %c0_32 = arith.constant 0 : index
      %c0_33 = arith.constant 0 : index
      %62 = vector.load %arg9[%c0_32, %c0_33] : memref<1x32xf32, #tpu.memory_space<vmem>>, vector<1x32xf32>
      %63 = vector.broadcast %62 : vector<1x32xf32> to vector<32x32xf32>
      %64 = arith.addf %61, %63 : vector<32x32xf32>
      %65 = arith.addf %64, %58 : vector<32x32xf32>
      %66 = tpu.iota {dimensions = array<i32: 0>} : vector<32x1xi32>
      %c24_i32 = arith.constant 24 : i32
      %67 = vector.broadcast %c24_i32 : i32 to vector<32x1xi32>
      %68 = arith.cmpi slt, %66, %67 : vector<32x1xi32>
      %69 = arith.extui %68 : vector<32x1xi1> to vector<32x1xi32>
      %70 = arith.sitofp %69 : vector<32x1xi32> to vector<32x1xf32>
      %71 = vector.broadcast %70 : vector<32x1xf32> to vector<32x32xf32>
      %72 = arith.mulf %65, %71 : vector<32x32xf32>
      %cst_34 = arith.constant dense<0.000000e+00> : vector<32xf32>
      %73 = vector.multi_reduction <add>, %72, %cst_34 [0] : vector<32x32xf32> to vector<32xf32>
      %74 = vector.shape_cast %73 : vector<32xf32> to vector<1x32xf32>
      %cst_35 = arith.constant 0.0416666679 : f32
      %75 = vector.broadcast %cst_35 : f32 to vector<1x32xf32>
      %76 = arith.mulf %74, %75 : vector<1x32xf32>
      %77 = vector.broadcast %76 : vector<1x32xf32> to vector<32x32xf32>
      %78 = arith.subf %65, %77 : vector<32x32xf32>
      %79 = vector.broadcast %70 : vector<32x1xf32> to vector<32x32xf32>
      %80 = arith.mulf %78, %79 : vector<32x32xf32>
      %81 = arith.mulf %80, %80 : vector<32x32xf32>
      %cst_36 = arith.constant dense<0.000000e+00> : vector<32xf32>
      %82 = vector.multi_reduction <add>, %81, %cst_36 [0] : vector<32x32xf32> to vector<32xf32>
      %83 = vector.shape_cast %82 : vector<32xf32> to vector<1x32xf32>
      %cst_37 = arith.constant 0.0416666679 : f32
      %84 = vector.broadcast %cst_37 : f32 to vector<1x32xf32>
      %85 = arith.mulf %83, %84 : vector<1x32xf32>
      %86 = vector.broadcast %76 : vector<1x32xf32> to vector<32x32xf32>
      %87 = arith.subf %65, %86 : vector<32x32xf32>
      %cst_38 = arith.constant 9.99999974E-6 : f32
      %88 = vector.broadcast %cst_38 : f32 to vector<1x32xf32>
      %89 = arith.addf %85, %88 : vector<1x32xf32>
      %90 = math.rsqrt %89 : vector<1x32xf32>
      %91 = vector.broadcast %90 : vector<1x32xf32> to vector<32x32xf32>
      %92 = arith.mulf %87, %91 : vector<32x32xf32>
      %c0_39 = arith.constant 0 : index
      %c0_40 = arith.constant 0 : index
      %93 = vector.load %arg10[%c0_39, %c0_40] : memref<1x32xf32, #tpu.memory_space<vmem>>, vector<1x32xf32>
      %94 = vector.broadcast %93 : vector<1x32xf32> to vector<32x32xf32>
      %95 = arith.mulf %92, %94 : vector<32x32xf32>
      %c0_41 = arith.constant 0 : index
      %c0_42 = arith.constant 0 : index
      %96 = vector.load %arg11[%c0_41, %c0_42] : memref<1x32xf32, #tpu.memory_space<vmem>>, vector<1x32xf32>
      %97 = vector.broadcast %96 : vector<1x32xf32> to vector<32x32xf32>
      %98 = arith.addf %95, %97 : vector<32x32xf32>
      %c0_43 = arith.constant 0 : index
      %c0_44 = arith.constant 0 : index
      %99 = vector.load %arg1[%c0_43, %c0_44] : memref<32x32xf32, #tpu.memory_space<vmem>>, vector<32x32xf32>
      %cst_45 = arith.constant 0.000000e+00 : f32
      %cst_46 = arith.constant 6.000000e+00 : f32
      %100 = vector.broadcast %cst_45 : f32 to vector<32x32xf32>
      %101 = arith.maximumf %100, %98 : vector<32x32xf32>
      %102 = vector.broadcast %cst_46 : f32 to vector<32x32xf32>
      %103 = arith.minimumf %102, %101 : vector<32x32xf32>
      %104 = arith.addf %99, %103 : vector<32x32xf32>
      %c0_47 = arith.constant 0 : index
      %c0_48 = arith.constant 0 : index
      %105 = vector.load %arg12[%c0_47, %c0_48] : memref<32x32xf32, #tpu.memory_space<vmem>>, vector<32x32xf32>
      tpu.vector_store %arg12[%c0_47, %c0_48], %104 {strides = array<i32>} : memref<32x32xf32, #tpu.memory_space<vmem>>, vector<32x32xf32>,
    } else {
    }
    return
  }
  func.func @transform_0(%arg0: i32) -> (i32, i32) {
    %c0_i32 = arith.constant 0 : i32
    %c0_i32_0 = arith.constant 0 : i32
    %c0_i32_1 = arith.constant 0 : i32
    return %c0_i32, %c0_i32_0 : i32, i32
  }
  func.func @transform_1(%arg0: i32) -> (i32, i32) {
    %c0_i32 = arith.constant 0 : i32
    %c0_i32_0 = arith.constant 0 : i32
    return %arg0, %c0_i32 : i32, i32
  }
  func.func @transform_2(%arg0: i32) -> (i32, i32) {
    %c0_i32 = arith.constant 0 : i32
    %c0_i32_0 = arith.constant 0 : i32
    return %arg0, %c0_i32 : i32, i32
  }
  func.func @transform_3(%arg0: i32) -> (i32, i32) {
    %c0_i32 = arith.constant 0 : i32
    %c0_i32_0 = arith.constant 0 : i32
    %c0_i32_1 = arith.constant 0 : i32
    return %c0_i32, %c0_i32_0 : i32, i32
  }
  func.func @transform_4(%arg0: i32) -> (i32, i32) {
    %c0_i32 = arith.constant 0 : i32
    %c0_i32_0 = arith.constant 0 : i32
    %c0_i32_1 = arith.constant 0 : i32
    return %c0_i32, %c0_i32_0 : i32, i32
  }
  func.func @transform_5(%arg0: i32) -> (i32, i32) {
    %c0_i32 = arith.constant 0 : i32
    %c0_i32_0 = arith.constant 0 : i32
    %c0_i32_1 = arith.constant 0 : i32
    return %c0_i32, %c0_i32_0 : i32, i32
  }
  func.func @transform_6(%arg0: i32) -> (i32, i32) {
    %c0_i32 = arith.constant 0 : i32
    %c0_i32_0 = arith.constant 0 : i32
    %c0_i32_1 = arith.constant 0 : i32
    return %c0_i32, %c0_i32_0 : i32, i32
  }
  func.func @transform_7(%arg0: i32) -> (i32, i32) {
    %c0_i32 = arith.constant 0 : i32
    %c0_i32_0 = arith.constant 0 : i32
    %c0_i32_1 = arith.constant 0 : i32
    return %c0_i32, %c0_i32_0 : i32, i32
  }
  func.func @transform_8(%arg0: i32) -> (i32, i32) {
    %c0_i32 = arith.constant 0 : i32
    %c0_i32_0 = arith.constant 0 : i32
    %c0_i32_1 = arith.constant 0 : i32
    return %c0_i32, %c0_i32_0 : i32, i32
  }
  func.func @transform_9(%arg0: i32) -> (i32, i32) {
    %c0_i32 = arith.constant 0 : i32
    %c0_i32_0 = arith.constant 0 : i32
    %c0_i32_1 = arith.constant 0 : i32
    return %c0_i32, %c0_i32_0 : i32, i32
  }
  func.func @transform_10(%arg0: i32) -> (i32, i32) {
    %c0_i32 = arith.constant 0 : i32
    %c0_i32_0 = arith.constant 0 : i32
    %c0_i32_1 = arith.constant 0 : i32
    return %c0_i32, %c0_i32_0 : i32, i32
  }
  func.func @transform_11(%arg0: i32) -> (i32, i32) {
    %c0_i32 = arith.constant 0 : i32
    %c0_i32_0 = arith.constant 0 : i32
    %c0_i32_1 = arith.constant 0 : i32
    return %c0_i32, %c0_i32_0 : i32, i32
  }
}

</mosaic_0001>

<bundles_post_ra>
// kernel: tpu_custom_call.1
= control target key start
LH: loop header
LB: loop body
LE: loop exit
PB: predicated region body
PF: predicated region fallthrough
CT: control target
= control target key end

     0   :  { %16 = vsyncpa [#allocation5], 0  ;;  %s1832_s17 = smov 0   ;;  %s2092_s0 = inlined_call_operand.vmem [shape: f32[32,32], index: 0, kind: input, shape index: {}]   ;;  %s2093_s1 = inlined_call_operand.vmem [shape: bf16[256,32], index: 1, kind: input, shape index: {}]   ;;  %s2094_s2 = inlined_call_operand.vmem [shape: s32[256,2], index: 2, kind: input, shape index: {}]   ;;  %s2095_s3 = inlined_call_operand.vmem [shape: f32[32,256], index: 3, kind: input, shape index: {}]   ;;  %s2096_s4 = inlined_call_operand.vmem [shape: f32[1,256], index: 4, kind: input, shape index: {}]   ;;  %s2097_s5 = inlined_call_operand.vmem [shape: bf16[32,64], index: 5, kind: input, shape index: {}]   ;;  %s2098_s6 = inlined_call_operand.vmem [shape: f32[1,64], index: 6, kind: input, shape index: {}]   ;;  %s2099_s7 = inlined_call_operand.vmem [shape: f32[32,32], index: 7, kind: input, shape index: {}]   ;;  %s2100_s8 = inlined_call_operand.vmem [shape: f32[1,32], index: 8, kind: input, shape index: {}]   ;;  %s2101_s9 = inlined_call_operand.vmem [shape: f32[1,32], index: 9, kind: input, shape index: {}]   ;;  %s2102_s10 = inlined_call_operand.vmem [shape: f32[1,32], index: 10, kind: input, shape index: {}]   ;;  %s2103_s11 = inlined_call_operand.hbm [shape: f32[32,32], index: 11, kind: output, shape index: {}]  }
   0x1 LB: > { %s1838_s18 = sadd.s32 4294967295, %s1761_s17   ;;  %p1454_p0 = scmp.ge.s32.totalorder %s1761_s17, 1  ;;  %s1761_s17 = sphi %s1832_s17, %s22_s17  }
   0x2   : > { %p345_p1 = scmp.lt.s32.totalorder %s1761_s17, 5 }
   0x4   : > { %p346_p2 = pnand %p1454_p0, %p345_p1 }
   0x5   : > { %s1455_s19 = sshll.u32 (!%p346_p2), %s1838_s18, 3  ;;  %p1459_p4 = scmp.ne.s32.totalorder (!%p346_p2), %s1838_s18, 0 }
   0x6   : > { %349 = sbr.rel (%p346_p2) target bundleno = 1244 (0x4dc), region = 64  ;;  %p386_p3 = scmp.lt.s32.totalorder (!%p346_p2), %s1455_s19, 31 }
   0xb   : > { %s2105_s19 = smov (!%p386_p3, %s1455_s19), 31  ;;  %401 = sbr.rel (%p1459_p4) target bundleno = 230 (0xe6), region = 68 }
   0xc   : > { %s1456_s20 = sshll.u32 %s2105_s19, 2  ;;  %s1458_s21 = sshll.u32 %s2105_s19, 3 }
   0xd   : > { %s1846_s24 = scalar_lea.vmem %s2093_s1, %s1456_s20  ;;  %s1851_s27 = scalar_lea.vmem %s2094_s2, %s1458_s21 }
  0x10   : > { %v413_v0 = vld [vmem:[%s2095_s3 + $0x38] sm:$0xff]  ;;  %v412_v1 = vld [vmem:[%s2095_s3 + $0x30] sm:$0xff]  ;;  %v411_v2 = vld [vmem:[%s2095_s3 + $0x28] sm:$0xff]  ;;  %vm568_vm0 = vcmask 523264   ;;  %v1763_v4 = vmov 0.0   ;;  %vm426_vm1 = vcmask 261120   ;;  %v416_v13 = vlaneseq }
  0x11   : > { %463 = vmatprep.subr.mxu0 %v413_v0  ;;  %1626 = vmatprep.subr.mxu1 %v413_v0  ;;  %v410_v3 = vld [vmem:[%s2095_s3 + $0x20] sm:$0xff]  ;;  %569 = vst.msk [vmem:[#allocation3] sm:$0xff] %vm568_vm0, %v1763_v4  ;;  %570 = vst.msk [vmem:[#allocation3 + $0x8] sm:$0xff] %vm568_vm0, %v1763_v4  ;;  %v409_v5 = vld [vmem:[%s2095_s3 + $0x18] sm:$0xff] }
  0x12   : > { %571 = vst.msk [vmem:[#allocation3 + $0x10] sm:$0xff] %vm568_vm0, %v1763_v4  ;;  %572 = vst.msk [vmem:[#allocation3 + $0x18] sm:$0xff] %vm568_vm0, %v1763_v4  ;;  %464 = vmatpush1.msra.mxu0 %v412_v1  ;;  %1630 = vmatpush1.msra.mxu1 %v412_v1  ;;  %v408_v6 = vld [vmem:[%s2095_s3 + $0x10] sm:$0xff]  ;;  %v407_v7 = vld [vmem:[%s2095_s3 + $0x8] sm:$0xff]  ;;  %v417_v14 = vshrl.u32 %v416_v13, 7 }
  0x13   : > { %465 = vmatprep.subr.mxu0 %v411_v2  ;;  %1627 = vmatprep.subr.mxu1 %v411_v2  ;;  %v406_v8 = vld [vmem:[%s2095_s3] sm:$0xff]  ;;  %v404_v10 = vld [vmem:[%s2092_s0 + $0x10] sm:$0xff]  ;;  %v403_v11 = vld [vmem:[%s2092_s0 + $0x8] sm:$0xff] }
  0x14   : > { %466 = vmatpush1.msra.mxu0 %v410_v3  ;;  %1631 = vmatpush1.msra.mxu1 %v410_v3  ;;  %v402_v9 = vld [vmem:[%s2092_s0] sm:$0xff]  ;;  %v405_v12 = vld [vmem:[%s2092_s0 + $0x18] sm:$0xff]  ;;  %v418_v15 = vsub.s32 0, %v417_v14  ;;  %v422_v17 = vsub.s32 1, %v417_v14 }
  0x15   : > { %467 = vmatprep.subr.mxu0 %v409_v5  ;;  %1628 = vmatprep.subr.mxu1 %v409_v5  ;;  %v414_v16 = vld [vmem:[%s2096_s4] sm:$0x3] }
  0x16   : > { %468 = vmatpush1.msra.mxu0 %v408_v6  ;;  %1632 = vmatpush1.msra.mxu1 %v408_v6  ;;  %v419_v20 = vrot.slane %v414_v16, %v418_v15  ;;  %v423_v21 = vrot.slane %v414_v16, %v422_v17 }
  0x17   : > { %469 = vmatprep.subr.mxu0 %v407_v7  ;;  %1629 = vmatprep.subr.mxu1 %v407_v7 }
  0x18   : > { %470 = vmatpush1.msra.mxu0 %v406_v8  ;;  %1633 = vmatpush1.msra.mxu1 %v406_v8 }
  0x19   : > { %503 = vmatprep.mubr.f32.mxu0 %v1763_v4  ;;  %515 = vmatprep.mubr.f32.mxu1 %v1763_v4 }
  0x1a   : > { %1460 = vmatmul.mubr.msk.f32.vlgmr.msra.gmra.mxu0 %vm426_vm1, %v402_v9  ;;  %1462 = vmatmul.mubr.msk.f32.vlgmr.msra.gmra.mxu1 %vm426_vm1, %v404_v10 }
  0x1b   : > { %509 = vmatprep.mubr.f32.mxu0 %v1763_v4  ;;  %521 = vmatprep.mubr.f32.mxu1 %v1763_v4 }
  0x1e   : > { %1461 = vmatmul.mubr.msk.f32.gmra.mxu0 %vm426_vm1, %v403_v11  ;;  %1463 = vmatmul.mubr.msk.f32.gmra.mxu1 %vm426_vm1, %v405_v12 }
  0xda   : > { %v505_v18 = vpop.f32.mrf.mxu0  ;;  %v517_v19 = vpop.f32.mrf.mxu1 }
  0xdb   : > { %v506_v26 = vadd.f32 %v505_v18, %v419_v20  ;;  %v518_v27 = vadd.f32 %v517_v19, %v419_v20 }
  0xdc   : > { %v507_v22 = vpop.f32.mrf.mxu0  ;;  %v519_v23 = vpop.f32.mrf.mxu1 }
  0xdd   : > { %v508_v30 = vadd.f32 %v507_v22, %v423_v21  ;;  %v520_v31 = vadd.f32 %v519_v23, %v423_v21 }
  0xde   : > { %v511_v24 = vpop.f32.mrf.mxu0  ;;  %v523_v25 = vpop.f32.mrf.mxu1 }
  0xdf   : > { %v512_v28 = vadd.f32 %v511_v24, %v419_v20  ;;  %v524_v29 = vadd.f32 %v523_v25, %v419_v20 }
  0xe0   : > { %v513_v32 = vpop.f32.mrf.mxu0  ;;  %v525_v33 = vpop.f32.mrf.mxu1 }
  0xe1   : > { %v1524_v34 = vpack.c.bf16 %v512_v28, %v506_v26  ;;  %v1529_v35 = vpack.c.bf16 %v524_v29, %v518_v27  ;;  %v514_v36 = vadd.f32 %v513_v32, %v423_v21  ;;  %v526_v37 = vadd.f32 %v525_v33, %v423_v21 }
  0xe3   : > { %1525 = vst [vmem:[#allocation2] sm:$0xff] %v1524_v34   ;;  %1541 = vst [vmem:[#allocation2 + $0x8] sm:$0xff] %v1529_v35   ;;  %v1534_v38 = vpack.c.bf16 %v514_v36, %v508_v30  ;;  %v1539_v39 = vpack.c.bf16 %v526_v37, %v520_v31 }
  0xe5   : > { %1542 = vst [vmem:[#allocation2 + $0x10] sm:$0xff] %v1534_v38   ;;  %1543 = vst [vmem:[#allocation2 + $0x18] sm:$0xff] %v1539_v39  }
  0xe6 PF: > { %v1894_v40 = vld [vmem:[%s1851_s27 + $0x10] sm:$0xff]  ;;  %v1897_v41 = vld [vmem:[%s1851_s27] sm:$0xff]  ;;  %v703_v42 = vld [vmem:[%s1851_s27 + $0x8] sm:$0xff]  ;;  %v1764_v43 = vmov 1   ;;  %v1765_v50 = vmov 0   ;;  %vm624_vm2 = vcmask 261120   ;;  %v710_v4 = vlaneseq }
  0xe7   : > { %1667 = vset.pattern.permute.xlu0 %v1764_v43  ;;  %1665 = vset.pattern.permute.xlu1 %v1764_v43  ;;  %v715_v44 = vadd.s32 32, %v1894_v40  ;;  %v713_v45 = vadd.s32 32, %v1897_v41  ;;  %v714_v47 = vadd.s32 32, %v703_v42  ;;  %v1677_v49 = vld [vmem:[%s2097_s5 + $0x8] sm:$0xff]   ;;  %v705_v51 = vld [vmem:[%s1851_s27 + $0x18] sm:$0xff]  ;;  %v1679_v53 = vld [vmem:[%s2097_s5] sm:$0xff]  }
  0xe8   : > { %1572 = vmatprep.subr.bf16.mxu0 %v1677_v49  ;;  %v716_v55 = vadd.s32 32, %v705_v51  ;;  %v1681_v56 = vld [vmem:[%s1846_s24] sm:$0xff]   ;;  %v1682_v57 = vld [vmem:[%s1846_s24 + $0x8] sm:$0xff]   ;;  %v708_v60 = vld [vmem:[%s1851_s27 + $0x30] sm:$0xff]  ;;  %v1931_v5 = vand.u32 127, %v710_v4  ;;  %v1766_v14 = vmov 0.0  }
  0xe9   : > { %752 = vperm.xlu0 %1667, %v715_v44   ;;  %746 = vperm.xlu1 %1665, %v713_v45   ;;  %v707_v58 = vld [vmem:[%s1851_s27 + $0x28] sm:$0xff]  ;;  %v706_v59 = vld [vmem:[%s1851_s27 + $0x20] sm:$0xff]  ;;  %v719_v62 = vadd.s32 32, %v708_v60  ;;  %v709_v0 = vld [vmem:[%s1851_s27 + $0x38] sm:$0xff]  ;;  %vm829_vm6 = vcmask 523264   ;;  %p1501_p5 = scmp.ne.s32.totalorder %s1838_s18, 3 }
  0xea   : > { %v1678_v52 = vld [vmem:[#allocation2 + $0x8] sm:$0xff]   ;;  %1573 = vmatpush3.bf16.msra.mxu0 %v1677_v49  ;;  %v1680_v54 = vld [vmem:[#allocation2] sm:$0xff]   ;;  %1576 = vmatprep.mubr.msk.bf16.mxu0 %vm624_vm2, %v1681_v56  ;;  %v717_v61 = vadd.s32 32, %v706_v59  ;;  %v718_v63 = vadd.s32 32, %v707_v58  ;;  %v720_v1 = vadd.s32 32, %v709_v0  ;;  %v1683_v2 = vld [vmem:[%s1846_s24 + $0x10] sm:$0xff]  }
  0xeb   : > { %1574 = vmatprep.subr.bf16.mxu0 %v1679_v53  ;;  %v1684_v3 = vld [vmem:[%s1846_s24 + $0x18] sm:$0xff]   ;;  %vm712_vm3 = vcmp.lt.s32.totalorder %v1931_v5, 32  ;;  %s1767_s24 = smov 64   ;;  %s1768_s28 = smov (!%p1501_p5), 96  }
  0xec   : > { %v1675_v46 = vld [vmem:[#allocation2 + $0x18] sm:$0xff]   ;;  %v1676_v48 = vld [vmem:[#allocation2 + $0x10] sm:$0xff]  }
  0xed   : > { %1584 = vmatprep.subr.bf16.mxu1 %v1675_v46  ;;  %1668 = vset.pattern.permute.xlu0 %v1765_v50 }
  0xee   : > { %1585 = vmatpush3.bf16.msra.mxu1 %v1675_v46  ;;  %749 = vperm.xlu1 %1665, %v714_v47  }
  0xef   : > { %1586 = vmatprep.subr.bf16.mxu1 %v1676_v48  ;;  %722 = vperm.xlu0 %1668, %v1897_v41  }
  0xf0   : > { %1575 = vmatpush3.bf16.msra.mxu0 %v1679_v53 }
  0xf2   : > { %1587 = vmatpush3.bf16.msra.mxu1 %v1676_v48  ;;  %1666 = vset.pattern.permute.xlu1 %v1765_v50 }
  0xf3   : > { %1588 = vmatprep.subr.bf16.mxu1 %v1678_v52  ;;  %725 = vperm.xlu0 %1668, %v703_v42  }
  0xf4   : > { %731 = vperm.xlu1 %1666, %v705_v51   ;;  %1577 = vmatmul.mubr.msk.bf16.vlgmr.msra.gmra.mxu0 %vm624_vm2, %v1682_v57 }
  0xf5   : > { %1580 = vmatprep.mubr.msk.bf16.mxu0 %vm624_vm2, %v1683_v2 }
  0xf6   : > { %1589 = vmatpush3.bf16.msra.mxu1 %v1678_v52 }
  0xf7   : > { %1590 = vmatprep.subr.bf16.mxu1 %v1680_v54  ;;  %728 = vperm.xlu0 %1668, %v1894_v40  }
  0xf8   : > { %1669 = vset.pattern.permute.xlu1 %v1764_v43 }
  0xf9   : > { %755 = vperm.xlu1 %1669, %v716_v55  }
  0xfa   : > { %1591 = vmatpush3.bf16.msra.mxu1 %v1680_v54 }
  0xfb   : > { %737 = vperm.xlu0 %1668, %v707_v58  }
  0xfc   : > { %1581 = vmatmul.mubr.msk.bf16.gmra.mxu0 %vm624_vm2, %v1684_v3 }
  0xfd   : > { %1670 = vset.pattern.permute.xlu1 %v1765_v50 }
  0xfe   : > { %734 = vperm.xlu1 %1670, %v706_v59  }
  0xff   : > { %740 = vperm.xlu0 %1668, %v708_v60  }
 0x102   : > { %1671 = vset.pattern.permute.xlu1 %v1764_v43 }
 0x103   : > { %758 = vperm.xlu1 %1671, %v717_v61   ;;  %1673 = vset.pattern.permute.xlu0 %v1764_v43 }
 0x104   : > { %764 = vperm.xlu0 %1673, %v719_v62  }
 0x107   : > { %761 = vperm.xlu1 %1671, %v718_v63  }
 0x108   : > { %1011 = vperm.xlu0 %1673, %v703_v42  }
 0x10b   : > { %1672 = vset.pattern.permute.xlu1 %v1765_v50 }
 0x10c   : > { %743 = vperm.xlu1 %1672, %v709_v0   ;;  %1017 = vperm.xlu0 %1673, %v705_v51  }
 0x110   : > { %1674 = vset.pattern.permute.xlu1 %v1764_v43  ;;  %1023 = vperm.xlu0 %1673, %v707_v58  }
 0x111   : > { %767 = vperm.xlu1 %1674, %v720_v1  }
 0x114   : > { %1029 = vperm.xlu0 %1673, %v709_v0  }
 0x115   : > { %1008 = vperm.xlu1 %1674, %v1897_v41  }
 0x119   : > { %1014 = vperm.xlu1 %1674, %v1894_v40  }
 0x11d   : > { %1020 = vperm.xlu1 %1674, %v706_v59  }
 0x121   : > { %1026 = vperm.xlu1 %1674, %v708_v60  }
 0x164   : > { %v747_v6 = vpop.permute.xlu1 %746  ;;  %v753_v7 = vpop.permute.xlu0 %752 }
 0x169   : > { %v750_v8 = vpop.permute.xlu1 %749 }
 0x16a   : > { %v723_v9 = vpop.permute.xlu0 %722 }
 0x16b   : > { %v769_v10 = vsel %vm712_vm3, %v723_v9, %v747_v6 }
 0x16c   : > { %vm777_vm4 = vcmp.eq.s32.totalorder %v1931_v5, %v769_v10 }
 0x16d   : > { %v785_v15 = vsel %vm777_vm4, 1.0, %v1766_v14 }
 0x16e   : > { %v726_v11 = vpop.permute.xlu0 %725 }
 0x16f   : > { %v732_v12 = vpop.permute.xlu1 %731  ;;  %v770_v13 = vsel %vm712_vm3, %v726_v11, %v750_v8 }
 0x170   : > { %vm778_vm5 = vcmp.eq.s32.totalorder %v1931_v5, %v770_v13 }
 0x171   : > { %v786_v16 = vsel %vm778_vm5, 1.0, %v1766_v14 }
 0x172   : > { %v729_v17 = vpop.permute.xlu0 %728  ;;  %v793_v18 = vpack.c.bf16 %v786_v16, %v785_v15  ;;  %v1472_v16 = vld [vmem:[%s2098_s6] ss:$0 sm:$0xff] }
 0x173   : > { %v771_v19 = vsel %vm712_vm3, %v729_v17, %v753_v7 }
 0x174   : > { %v756_v20 = vpop.permute.xlu1 %755  ;;  %vm779_vm7 = vcmp.eq.s32.totalorder %v1931_v5, %v771_v19  ;;  %1592 = vmatprep.mubr.msk.bf16.mxu1 %vm829_vm6, %v793_v18 }
 0x175   : > { %v772_v21 = vsel %vm712_vm3, %v732_v12, %v756_v20  ;;  %v787_v22 = vsel %vm779_vm7, 1.0, %v1766_v14 }
 0x176   : > { %vm780_vm8 = vcmp.eq.s32.totalorder %v1931_v5, %v772_v21  ;;  %v738_v26 = vpop.permute.xlu0 %737 }
 0x177   : > { %v788_v23 = vsel %vm780_vm8, 1.0, %v1766_v14 }
 0x178   : > { %v794_v24 = vpack.c.bf16 %v788_v23, %v787_v22 }
 0x179   : > { %v735_v25 = vpop.permute.xlu1 %734 }
 0x17a   : > { %1593 = vmatmul.mubr.msk.bf16.vlgmr.msra.gmra.mxu1 %vm829_vm6, %v794_v24  ;;  %v741_v29 = vpop.permute.xlu0 %740 }
 0x17e   : > { %v759_v27 = vpop.permute.xlu1 %758 }
 0x17f   : > { %v773_v28 = vsel %vm712_vm3, %v735_v25, %v759_v27  ;;  %v765_v34 = vpop.permute.xlu0 %764 }
 0x180   : > { %vm781_vm9 = vcmp.eq.s32.totalorder %v1931_v5, %v773_v28  ;;  %v775_v37 = vsel %vm712_vm3, %v741_v29, %v765_v34 }
 0x181   : > { %v789_v32 = vsel %vm781_vm9, 1.0, %v1766_v14  ;;  %vm783_vm11 = vcmp.eq.s32.totalorder %v1931_v5, %v775_v37 }
 0x182   : > { %v762_v30 = vpop.permute.xlu1 %761  ;;  %v791_v40 = vsel %vm783_vm11, 1.0, %v1766_v14 }
 0x183   : > { %v774_v31 = vsel %vm712_vm3, %v738_v26, %v762_v30  ;;  %v1012_v52 = vpop.permute.xlu0 %1011 }
 0x184   : > { %vm782_vm10 = vcmp.eq.s32.totalorder %v1931_v5, %v774_v31  ;;  %vm1032_vm14 = vcmp.eq.s32.totalorder %v1931_v5, %v1012_v52 }
 0x185   : > { %v790_v33 = vsel %vm782_vm10, 1.0, %v1766_v14  ;;  %v1040_v57 = vsel %vm1032_vm14, 1.0, %v1766_v14 }
 0x186   : > { %v795_v35 = vpack.c.bf16 %v790_v33, %v789_v32 }
 0x187   : > { %v744_v36 = vpop.permute.xlu1 %743  ;;  %v1018_v54 = vpop.permute.xlu0 %1017 }
 0x188   : > { %1596 = vmatprep.mubr.msk.bf16.mxu1 %vm829_vm6, %v795_v35  ;;  %vm1034_vm0 = vcmp.eq.s32.totalorder %v1931_v5, %v1018_v54 }
 0x189   : > { %v1042_v61 = vsel %vm1034_vm0, 1.0, %v1766_v14 }
 0x18b   : > { %v1024_v58 = vpop.permute.xlu0 %1023 }
 0x18c   : > { %v768_v38 = vpop.permute.xlu1 %767 }
 0x18d   : > { %v776_v39 = vsel %vm712_vm3, %v744_v36, %v768_v38  ;;  %vm1036_vm3 = vcmp.eq.s32.totalorder %v1931_v5, %v1024_v58 }
 0x18e   : > { %vm784_vm12 = vcmp.eq.s32.totalorder %v1931_v5, %v776_v39  ;;  %v1044_v2 = vsel %vm1036_vm3, 1.0, %v1766_v14 }
 0x18f   : > { %v792_v41 = vsel %vm784_vm12, 1.0, %v1766_v14  ;;  %v1030_v0 = vpop.permute.xlu0 %1029 }
 0x190   : > { %v796_v42 = vpack.c.bf16 %v792_v41, %v791_v40  ;;  %v1009_v51 = vpop.permute.xlu1 %1008  ;;  %vm1038_vm5 = vcmp.eq.s32.totalorder %v1931_v5, %v1030_v0 }
 0x191   : > { %vm1031_vm13 = vcmp.eq.s32.totalorder %v1931_v5, %v1009_v51  ;;  %v1046_v7 = vsel %vm1038_vm5, 1.0, %v1766_v14 }
 0x192   : > { %1597 = vmatmul.mubr.msk.bf16.gmra.mxu1 %vm829_vm6, %v796_v42  ;;  %v1039_v55 = vsel %vm1031_vm13, 1.0, %v1766_v14 }
 0x193   : > { %v1047_v59 = vpack.c.bf16 %v1040_v57, %v1039_v55 }
 0x194   : > { %v1015_v53 = vpop.permute.xlu1 %1014 }
 0x195   : > { %vm1033_vm15 = vcmp.eq.s32.totalorder %v1931_v5, %v1015_v53 }
 0x196   : > { %v1041_v60 = vsel %vm1033_vm15, 1.0, %v1766_v14 }
 0x197   : > { %v1048_v63 = vpack.c.bf16 %v1042_v61, %v1041_v60 }
 0x198   : > { %v1021_v56 = vpop.permute.xlu1 %1020 }
 0x199   : > { %vm1035_vm1 = vcmp.eq.s32.totalorder %v1931_v5, %v1021_v56 }
 0x19a   : > { %v1043_v1 = vsel %vm1035_vm1, 1.0, %v1766_v14 }
 0x19b   : > { %v1049_v4 = vpack.c.bf16 %v1044_v2, %v1043_v1 }
 0x19c   : > { %v1027_v62 = vpop.permute.xlu1 %1026 }
 0x19d   : > { %vm1037_vm4 = vcmp.eq.s32.totalorder %v1931_v5, %v1027_v62 }
 0x19e   : > { %v1045_v6 = vsel %vm1037_vm4, 1.0, %v1766_v14 }
 0x19f   : > { %v1050_v9 = vpack.c.bf16 %v1046_v7, %v1045_v6 }
 0x1b4   : > { %v1578_v3 = vpop.f32.mrf.mxu0 }
 0x1b5   : > { %v680_v14 = vadd.f32 %v1578_v3, %v1472_v16 }
 0x1b6   : > { %v671_v8 = vpop.f32.mrf.mxu0 }
 0x1b7   : > { %v672_v28 = vadd.f32 %v1472_v16, %v671_v8 }
 0x1b8   : > { %v1579_v10 = vpop.f32.mrf.mxu0 }
 0x1b9   : > { %v683_v25 = vadd.f32 %v1579_v10, %v1472_v16 }
 0x1ba   : > { %v674_v11 = vpop.f32.mrf.mxu0 }
 0x1bb   : > { %v675_v31 = vadd.f32 %v1472_v16, %v674_v11 }
 0x1bc   : > { %v1582_v12 = vpop.f32.mrf.mxu0 }
 0x1bd   : > { %v696_v17 = vadd.f32 %v1582_v12, %v1472_v16 }
 0x1be   : > { %v687_v13 = vpop.f32.mrf.mxu0 }
 0x1bf   : > { %v688_v19 = vadd.f32 %v1472_v16, %v687_v13 }
 0x1c0   : > { %v1583_v15 = vpop.f32.mrf.mxu0 }
 0x1c1   : > { %v699_v5 = vadd.f32 %v1583_v15, %v1472_v16 }
 0x1c2   : > { %v690_v18 = vpop.f32.mrf.mxu0 }
 0x1c3   : > { %v691_v21 = vadd.f32 %v1472_v16, %v690_v18 }
 0x23a   : > { %v1970_v43 = vpop.f32.mrf.mxu1 }
 0x23b   : > { %975 = vrot.lane.b32.xlu1 %v1970_v43, %s1767_s24  ;;  %v909_v29 = vadd.f32 %v1970_v43, %v680_v14  ;;  %v1053_v14 = vld [vmem:[#allocation3 + $0x10] sm:$0xff] }
 0x23c   : > { %v1973_v44 = vpop.f32.mrf.mxu1 }
 0x23d   : > { %v1493_v34 = vmul.f32 -1.442695, %v909_v29  ;;  %v907_v35 = vadd.f32 %v1973_v44, %v672_v28 }
 0x23e   : > { %v1975_v45 = vpop.f32.mrf.mxu1 }
 0x23f   : > { %v910_v32 = vadd.f32 %v1975_v45, %v683_v25  ;;  %v1491_v38 = vmul.f32 -1.442695, %v907_v35 }
 0x240   : > { %v1977_v46 = vpop.f32.mrf.mxu1 }
 0x241   : > { %v1494_v36 = vmul.f32 -1.442695, %v910_v32  ;;  %v908_v37 = vadd.f32 %v1977_v46, %v675_v31 }
 0x243   : > { %v1492_v39 = vmul.f32 -1.442695, %v908_v37 }
 0x252   : > { %v1598_v47 = vpop.f32.mrf.mxu1 }
 0x253   : > { %983 = vrot.lane.b32.xlu1 %v1598_v47, %s1767_s24  ;;  %v913_v20 = vadd.f32 %v1598_v47, %v696_v17 }
 0x254   : > { %v892_v48 = vpop.f32.mrf.mxu1 }
 0x255   : > { %v1497_v23 = vmul.f32 -1.442695, %v913_v20  ;;  %v911_v24 = vadd.f32 %v892_v48, %v688_v19 }
 0x256   : > { %v1599_v49 = vpop.f32.mrf.mxu1 }
 0x257   : > { %979 = vrot.lane.b32.xlu1 %v892_v48, %s1767_s24  ;;  %985 = vrot.lane.b32.xlu0 %v1599_v49, %s1767_s24  ;;  %v914_v22 = vadd.f32 %v1599_v49, %v699_v5  ;;  %1685 = vpow2.f32 %v1497_v23  ;;  %v1495_v30 = vmul.f32 -1.442695, %v911_v24  ;;  %v1051_v24 = vld [vmem:[#allocation3] sm:$0xff] }
 0x258   : > { %v895_v50 = vpop.f32.mrf.mxu1 }
 0x259   : > { %v1498_v26 = vmul.f32 -1.442695, %v914_v22  ;;  %v912_v27 = vadd.f32 %v895_v50, %v691_v21 }
 0x25b   : > { %971 = vrot.lane.b32.xlu1 %v1973_v44, %s1767_s24  ;;  %981 = vrot.lane.b32.xlu0 %v895_v50, %s1767_s24  ;;  %1687 = vpow2.f32 %v1498_v26  ;;  %v1496_v33 = vmul.f32 -1.442695, %v912_v27  ;;  %v1054_v27 = vld [vmem:[#allocation3 + $0x18] sm:$0xff] }
 0x25c   : > { %1689 = vpow2.f32 %v1495_v30  ;;  %v1052_v30 = vld [vmem:[#allocation3 + $0x8] sm:$0xff] }
 0x25d   : > { %1691 = vpow2.f32 %v1496_v33 }
 0x25e   : > { %1693 = vpow2.f32 %v1493_v34 }
 0x25f   : > { %977 = vrot.lane.b32.xlu0 %v1975_v45, %s1767_s24  ;;  %1695 = vpow2.f32 %v1494_v36 }
 0x260   : > { %1697 = vpow2.f32 %v1491_v38 }
 0x261   : > { %1699 = vpow2.f32 %v1492_v39 }
 0x263   : > { %973 = vrot.lane.b32.xlu0 %v1977_v46, %s1767_s24 }
 0x264   : > { %v1686_v40 = vpop.eup %1685 }
 0x265   : > { %v945_v42 = vadd.f32 1.0, %v1686_v40 }
 0x267   : > { %1701 = vrcp.f32 %v945_v42 }
 0x268   : > { %v1688_v41 = vpop.eup %1687 }
 0x269   : > { %v1690_v43 = vpop.eup %1689  ;;  %v946_v45 = vadd.f32 1.0, %v1688_v41 }
 0x26a   : > { %v1692_v47 = vpop.eup %1691  ;;  %v943_v48 = vadd.f32 1.0, %v1690_v43 }
 0x26b   : > { %v1694_v44 = vpop.eup %1693  ;;  %1703 = vrcp.f32 %v946_v45  ;;  %v944_v49 = vadd.f32 1.0, %v1692_v47 }
 0x26c   : > { %v1696_v50 = vpop.eup %1695  ;;  %v941_v46 = vadd.f32 1.0, %v1694_v44  ;;  %1705 = vrcp.f32 %v943_v48 }
 0x26d   : > { %v1698_v51 = vpop.eup %1697  ;;  %v942_v52 = vadd.f32 1.0, %v1696_v50  ;;  %1707 = vrcp.f32 %v944_v49 }
 0x26e   : > { %v1700_v53 = vpop.eup %1699  ;;  %1709 = vrcp.f32 %v941_v46  ;;  %v939_v55 = vadd.f32 1.0, %v1698_v51 }
 0x26f   : > { %1711 = vrcp.f32 %v942_v52  ;;  %v940_v56 = vadd.f32 1.0, %v1700_v53 }
 0x270   : > { %1713 = vrcp.f32 %v939_v55 }
 0x271   : > { %1715 = vrcp.f32 %v940_v56 }
 0x274   : > { %v1702_v58 = vpop.eup %1701 }
 0x27e   : > { %1055 = vxpose.xlu1.c.b16.start [1/4] (short) (narrow) %v1047_v59, 32  ;;  %v1704_v59 = vpop.eup %1703 }
 0x27f   : > { %v1706_v0 = vpop.eup %1705 }
 0x280   : > { %v1708_v2 = vpop.eup %1707 }
 0x281   : > { %v1710_v7 = vpop.eup %1709 }
 0x282   : > { %1056 = vxpose.xlu1.c.b16.cont [2/4] (short) (narrow) %v1048_v63, 32 }
 0x286   : > { %1057 = vxpose.xlu1.c.b16.cont [3/4] (short) (narrow) %v1049_v4, 32 }
 0x28a   : > { %1058 = vxpose.xlu1.c.b16.end [4/4] (short) (narrow) %v1050_v9, 32  ;;  %v1712_v9 = vpop.eup %1711 }
 0x28b   : > { %v1714_v15 = vpop.eup %1713 }
 0x28c   : > { %v1716_v17 = vpop.eup %1715 }
 0x2ad   : > { %v976_v54 = vpop.permute.xlu1 %975 }
 0x2ae   : > { %v997_v11 = vmul.f32 %v1710_v7, %v976_v54 }
 0x2c5   : > { %v984_v57 = vpop.permute.xlu1 %983 }
 0x2c6   : > { %v1001_v61 = vmul.f32 %v1702_v58, %v984_v57 }
 0x2c9   : > { %v986_v60 = vpop.permute.xlu0 %985  ;;  %v980_v63 = vpop.permute.xlu1 %979 }
 0x2ca   : > { %v1002_v62 = vmul.f32 %v1704_v59, %v986_v60  ;;  %v999_v4 = vmul.f32 %v1706_v0, %v980_v63 }
 0x2cc   : > { %v1006_v1 = vpack.c.bf16 %v1002_v62, %v1001_v61 }
 0x2cd   : > { %v982_v3 = vpop.permute.xlu0 %981  ;;  %v972_v13 = vpop.permute.xlu1 %971 }
 0x2ce   : > { %v1000_v6 = vmul.f32 %v1708_v2, %v982_v3  ;;  %1600 = vmatprep.subr.bf16.mxu0 %v1006_v1  ;;  %v995_v18 = vmul.f32 %v1714_v15, %v972_v13 }
 0x2cf   : > { %1601 = vmatpush3.bf16.msra.mxu0 %v1006_v1 }
 0x2d0   : > { %v1005_v8 = vpack.c.bf16 %v1000_v6, %v999_v4 }
 0x2d1   : > { %v978_v10 = vpop.permute.xlu0 %977 }
 0x2d2   : > { %v998_v12 = vmul.f32 %v1712_v9, %v978_v10  ;;  %1602 = vmatprep.subr.bf16.mxu0 %v1005_v8 }
 0x2d3   : > { %1603 = vmatpush3.bf16.msra.mxu0 %v1005_v8 }
 0x2d4   : > { %v1004_v16 = vpack.c.bf16 %v998_v12, %v997_v11 }
 0x2d5   : > { %v974_v5 = vpop.permute.xlu0 %973 }
 0x2d6   : > { %v996_v19 = vmul.f32 %v1716_v17, %v974_v5  ;;  %1604 = vmatprep.subr.bf16.mxu0 %v1004_v16 }
 0x2d7   : > { %1605 = vmatpush3.bf16.msra.mxu0 %v1004_v16 }
 0x2d8   : > { %v1003_v20 = vpack.c.bf16 %v996_v19, %v995_v18 }
 0x2da   : > { %1606 = vmatprep.subr.bf16.mxu0 %v1003_v20 }
 0x2db   : > { %1607 = vmatpush3.bf16.msra.mxu0 %v1003_v20 }
 0x2e0   : > { %v1063_v21 = vpop.trf.xlu1 }
 0x2e1   : > { %1608 = vmatprep.mubr.msk.bf16.mxu0 %vm829_vm6, %v1063_v21 }
 0x2e4   : > { %v1064_v22 = vpop.trf.xlu1 }
 0x2e5   : > { %1609 = vmatmul.mubr.msk.bf16.vlgmr.msra.gmra.mxu0 %vm829_vm6, %v1064_v22 }
 0x3a5   : > { %v1610_v23 = vpop.f32.mrf.mxu0 }
 0x3a6   : > { %v1128_v25 = vadd.f32 %v1610_v23, %v1053_v14 }
 0x3a7   : > { %v1111_v26 = vpop.f32.mrf.mxu0 }
 0x3a8   : > { %1132 = vst.msk [vmem:[#allocation3 + $0x10] sm:$0xff] %vm829_vm6, %v1128_v25  ;;  %v1126_v28 = vadd.f32 %v1111_v26, %v1051_v24 }
 0x3a9   : > { %v1611_v29 = vpop.f32.mrf.mxu0 }
 0x3aa   : > { %1130 = vst.msk [vmem:[#allocation3] sm:$0xff] %vm829_vm6, %v1126_v28  ;;  %v1129_v31 = vadd.f32 %v1611_v29, %v1054_v27  ;;  %1137 = sbr.rel (%p1501_p5) target bundleno = 1228 (0x4cc), region = 72 }
 0x3ab   : > { %v1114_v32 = vpop.f32.mrf.mxu0 }
 0x3ac   : > { %1133 = vst.msk [vmem:[#allocation3 + $0x18] sm:$0xff] %vm829_vm6, %v1129_v31  ;;  %v1127_v33 = vadd.f32 %v1114_v32, %v1052_v30 }
 0x3ae   : > { %1131 = vst.msk [vmem:[#allocation3 + $0x8] sm:$0xff] %vm829_vm6, %v1127_v33 }
 0x3af   : > { %v1177_v34 = vld [vmem:[%s2099_s7 + $0x18] sm:$0xff]  ;;  %v1176_v35 = vld [vmem:[%s2099_s7 + $0x10] sm:$0xff]  ;;  %v1175_v36 = vld [vmem:[%s2099_s7 + $0x8] sm:$0xff] }
 0x3b0   : > { %1612 = vmatprep.subr.mxu0 %v1177_v34  ;;  %1634 = vmatprep.subr.mxu1 %v1177_v34  ;;  %v1174_v37 = vld [vmem:[%s2099_s7] sm:$0xff]  ;;  %v1140_v40 = vld [vmem:[#allocation3 + $0x10] sm:$0xff]  ;;  %v2037_v49 = vld [vmem:[%s2092_s0 + $0x8] sm:$0xff] }
 0x3b1   : > { %1613 = vmatpush3.msra.mxu0 %v1177_v34  ;;  %1638 = vmatpush3.msra.mxu1 %v1177_v34  ;;  %v1138_v38 = vld [vmem:[#allocation3] sm:$0xff]  ;;  %v1144_v43 = vadd.f32 1e-06, %v1140_v40  ;;  %v2032_v44 = vld [vmem:[%s2092_s0 + $0x10] sm:$0xff]  ;;  %v2042_v50 = vld [vmem:[%s2092_s0 + $0x18] sm:$0xff] }
 0x3b2   : > { %1614 = vmatprep.subr.mxu0 %v1176_v35  ;;  %1635 = vmatprep.subr.mxu1 %v1176_v35  ;;  %v1142_v39 = vadd.f32 1e-06, %v1138_v38  ;;  %v2027_v48 = vld [vmem:[%s2092_s0] sm:$0xff] }
 0x3b3   : > { %v1141_v42 = vld [vmem:[#allocation3 + $0x18] sm:$0xff]  ;;  %1615 = vmatpush3.msra.mxu0 %v1176_v35  ;;  %1639 = vmatpush3.msra.mxu1 %v1176_v35  ;;  %v1502_v58 = vld [vmem:[%s2100_s8] ss:$0 sm:$0xff] }
 0x3b4   : > { %v1145_v47 = vadd.f32 1e-06, %v1141_v42  ;;  %1616 = vmatprep.subr.mxu0 %v1175_v36  ;;  %1636 = vmatprep.subr.mxu1 %v1175_v36  ;;  %1717 = vrcp.f32 %v1142_v39 }
 0x3b5   : > { %v1139_v41 = vld [vmem:[#allocation3 + $0x8] sm:$0xff]  ;;  %1617 = vmatpush3.msra.mxu0 %v1175_v36  ;;  %1640 = vmatpush3.msra.mxu1 %v1175_v36  ;;  %1719 = vrcp.f32 %v1144_v43 }
 0x3b6   : > { %v1143_v45 = vadd.f32 1e-06, %v1139_v41  ;;  %1618 = vmatprep.subr.mxu0 %v1174_v37  ;;  %1637 = vmatprep.subr.mxu1 %v1174_v37 }
 0x3b7   : > { %1619 = vmatpush3.msra.mxu0 %v1174_v37  ;;  %1641 = vmatpush3.msra.mxu1 %v1174_v37 }
 0x3b8   : > { %1721 = vrcp.f32 %v1143_v45  ;;  %1620 = vmatprep.mubr.msk.f32.mxu0 %vm624_vm2, %v2027_v48  ;;  %1623 = vmatprep.mubr.msk.f32.mxu1 %vm624_vm2, %v2032_v44 }
 0x3b9   : > { %1723 = vrcp.f32 %v1145_v47  ;;  %1621 = vmatmul.mubr.msk.f32.vlgmr.msra.gmra.mxu0 %vm624_vm2, %v2037_v49  ;;  %1624 = vmatmul.mubr.msk.f32.vlgmr.msra.gmra.mxu1 %vm624_vm2, %v2042_v50 }
 0x3c1   : > { %v1718_v46 = vpop.eup %1717 }
 0x3c2   : > { %v1720_v51 = vpop.eup %1719  ;;  %1154 = vrot.lane.b32.xlu0 %v1718_v46, %s1768_s28 }
 0x3c3   : > { %1158 = vrot.lane.b32.xlu1 %v1720_v51, %s1768_s28 }
 0x3c5   : > { %v1722_v52 = vpop.eup %1721 }
 0x3c6   : > { %v1724_v53 = vpop.eup %1723  ;;  %1156 = vrot.lane.b32.xlu0 %v1722_v52, %s1768_s28 }
 0x3c7   : > { %1160 = vrot.lane.b32.xlu1 %v1724_v53, %s1768_s28 }
 0x434   : > { %v1155_v54 = vpop.permute.xlu0 %1154 }
 0x435   : > { %v1159_v55 = vpop.permute.xlu1 %1158  ;;  %v1166_v1 = vmul.f32 %v1155_v54, %v1138_v38 }
 0x436   : > { %v1168_v2 = vmul.f32 %v1159_v55, %v1140_v40  ;;  %v1507_v55 = vld [vmem:[%s2101_s9] ss:$0 sm:$0xff] }
 0x438   : > { %v1157_v56 = vpop.permute.xlu0 %1156 }
 0x439   : > { %v1161_v57 = vpop.permute.xlu1 %1160  ;;  %v1167_v59 = vmul.f32 %v1157_v56, %v1139_v41 }
 0x43a   : > { %v1169_v60 = vmul.f32 %v1161_v57, %v1141_v42 }
 0x479   : > { %v1622_v61 = vpop.f32.mrf.mxu0  ;;  %v1625_v62 = vpop.f32.mrf.mxu1 }
 0x47a   : > { %v1269_v63 = vadd.f32 %v1622_v61, %v1502_v58  ;;  %v1279_v0 = vadd.f32 %v1625_v62, %v1502_v58 }
 0x47b   : > { %v1263_v3 = vpop.f32.mrf.mxu0  ;;  %v1273_v4 = vpop.f32.mrf.mxu1 }
 0x47c   : > { %v1283_v6 = vadd.f32 %v1269_v63, %v1167_v59  ;;  %v1264_v7 = vadd.f32 %v1502_v58, %v1263_v3  ;;  %v1274_v8 = vadd.f32 %v1502_v58, %v1273_v4  ;;  %v1285_v9 = vadd.f32 %v1279_v0, %v1169_v60  ;;  %v1508_v60 = vld [vmem:[%s2102_s10] ss:$0 sm:$0xff] }
 0x47e   : > { %v1282_v10 = vadd.f32 %v1264_v7, %v1166_v1  ;;  %v1284_v11 = vadd.f32 %v1274_v8, %v1168_v2  ;;  %v1308_v12 = vsel %vm624_vm2, %v1283_v6, 0.0  ;;  %v1306_v15 = vmul.f32 0.0, %v1285_v9 }
 0x480   : > { %v1307_v13 = vsel %vm624_vm2, %v1282_v10, 0.0  ;;  %v1310_v17 = vsel %vm624_vm2, %v1284_v11, 0.0  ;;  %v1312_v18 = vsel %vm624_vm2, %v1306_v15, 0.0 }
 0x481   : > { %v1309_v16 = vadd.f32 %v1308_v12, %v1307_v13 }
 0x483   : > { %v1311_v5 = vadd.f32 %v1310_v17, %v1309_v16 }
 0x485   : > { %v1313_v19 = vadd.f32 %v1312_v18, %v1311_v5 }
 0x487   : > { %v1314_v20 = vrot.slane %v1313_v19, 4 }
 0x489   : > { %v1315_v21 = vadd.f32 %v1314_v20, %v1313_v19 }
 0x48b   : > { %v1316_v22 = vrot.slane %v1315_v21, 2 }
 0x48d   : > { %v1317_v14 = vadd.f32 %v1316_v22, %v1315_v21 }
 0x48f   : > { %v1318_v23 = vrot.slane %v1317_v14, 1 }
 0x491   : > { %v1319_v24 = vadd.f32 %v1318_v23, %v1317_v14 }
 0x493   : > { %v1320_v25 = vmul.f32 0.041666668, %v1319_v24 }
 0x495   : > { %v1321_v26 = vsub.f32 %v1282_v10, %v1320_v25  ;;  %v1322_v27 = vsub.f32 %v1283_v6, %v1320_v25  ;;  %v1323_v28 = vsub.f32 %v1284_v11, %v1320_v25  ;;  %v1324_v29 = vsub.f32 %v1285_v9, %v1320_v25 }
 0x497   : > { %v1328_v30 = vmul.f32 0.0, %v1324_v29  ;;  %v1329_v31 = vmul.f32 %v1321_v26, %v1321_v26  ;;  %v1330_v32 = vmul.f32 %v1322_v27, %v1322_v27  ;;  %v1331_v33 = vmul.f32 %v1323_v28, %v1323_v28 }
 0x499   : > { %v1332_v34 = vmul.f32 %v1328_v30, %v1328_v30  ;;  %v1333_v35 = vsel %vm624_vm2, %v1329_v31, 0.0  ;;  %v1334_v36 = vsel %vm624_vm2, %v1330_v32, 0.0  ;;  %v1336_v38 = vsel %vm624_vm2, %v1331_v33, 0.0 }
 0x49a   : > { %v1335_v37 = vadd.f32 %v1334_v36, %v1333_v35 }
 0x49b   : > { %v1338_v40 = vsel %vm624_vm2, %v1332_v34, 0.0 }
 0x49c   : > { %v1337_v39 = vadd.f32 %v1336_v38, %v1335_v37 }
 0x49e   : > { %v1339_v41 = vadd.f32 %v1338_v40, %v1337_v39 }
 0x4a0   : > { %v1340_v42 = vrot.slane %v1339_v41, 4 }
 0x4a2   : > { %v1341_v43 = vadd.f32 %v1340_v42, %v1339_v41 }
 0x4a4   : > { %v1342_v45 = vrot.slane %v1341_v43, 2 }
 0x4a6   : > { %v1343_v47 = vadd.f32 %v1342_v45, %v1341_v43 }
 0x4a8   : > { %v1344_v46 = vrot.slane %v1343_v47, 1 }
 0x4aa   : > { %v1345_v51 = vadd.f32 %v1344_v46, %v1343_v47 }
 0x4ac   : > { %v1346_v52 = vmul.f32 0.041666668, %v1345_v51 }
 0x4ae   : > { %v1347_v53 = vadd.f32 1e-05, %v1346_v52 }
 0x4b0   : > { %1725 = vrsqrt.f32 %v1347_v53 }
 0x4bd   : > { %v1726_v54 = vpop.eup %1725 }
 0x4be   : > { %v1349_v56 = vmul.f32 %v1726_v54, %v1321_v26  ;;  %v1350_v57 = vmul.f32 %v1726_v54, %v1322_v27  ;;  %v1351_v58 = vmul.f32 %v1726_v54, %v1323_v28  ;;  %v1352_v59 = vmul.f32 %v1726_v54, %v1324_v29 }
 0x4c0   : > { %v1360_v61 = vmul.f32 %v1507_v55, %v1349_v56  ;;  %v1361_v62 = vmul.f32 %v1507_v55, %v1350_v57  ;;  %v1362_v63 = vmul.f32 %v1507_v55, %v1351_v58  ;;  %v1363_v0 = vmul.f32 %v1507_v55, %v1352_v59 }
 0x4c2   : > { %v1371_v1 = vadd.f32 %v1508_v60, %v1360_v61  ;;  %v1372_v2 = vadd.f32 %v1508_v60, %v1361_v62  ;;  %v1373_v3 = vadd.f32 %v1508_v60, %v1362_v63  ;;  %v1374_v4 = vadd.f32 %v1508_v60, %v1363_v0 }
 0x4c4   : > { %v1375_v6 = vmax.f32 %v1371_v1, 0.0  ;;  %v1376_v7 = vmax.f32 %v1372_v2, 0.0  ;;  %v1377_v8 = vmax.f32 %v1373_v3, 0.0  ;;  %v1378_v9 = vmax.f32 %v1374_v4, 0.0 }
 0x4c6   : > { %v1379_v10 = vmin.f32 %v1375_v6, 6.0  ;;  %v1380_v11 = vmin.f32 %v1376_v7, 6.0  ;;  %v1381_v12 = vmin.f32 %v1377_v8, 6.0  ;;  %v1382_v13 = vmin.f32 %v1378_v9, 6.0 }
 0x4c8   : > { %v1383_v15 = vadd.f32 %v1379_v10, %v2027_v48  ;;  %v1384_v16 = vadd.f32 %v1380_v11, %v2037_v49  ;;  %v1385_v17 = vadd.f32 %v1381_v12, %v2032_v44  ;;  %v1386_v5 = vadd.f32 %v1382_v13, %v2042_v50 }
 0x4ca   : > { %1387 = vst.msk [vmem:[#allocation4] sm:$0xff] %vm624_vm2, %v1383_v15  ;;  %1388 = vst.msk [vmem:[#allocation4 + $0x8] sm:$0xff] %vm624_vm2, %v1384_v16 }
 0x4cb   : > { %1389 = vst.msk [vmem:[#allocation4 + $0x10] sm:$0xff] %vm624_vm2, %v1385_v17  ;;  %1390 = vst.msk [vmem:[#allocation4 + $0x18] sm:$0xff] %vm624_vm2, %v1386_v5 }
 0x4cc PF: > { %p1646_p6 = scmp.eq.s32.totalorder %s1838_s18, 3  ;;  %s1769_s16 = smov [#allocation4]  }
 0x4cd   : > { %s1397_s19 = sshll.u32 %s1769_s16, 4  ;;  %s1398_s19 = int_to_ptr.vmem [resolvable:$true] %s1397_s19 }
 0x4ce   : > { %s1727_s20 = scalar_lea.vmem %s1398_s19, 512  ;;  %p1734_p10 = scmp.lt.s32.totalorder %s1398_s19, %s1398_s19 }
 0x4cf   : > { %p1728_p7 = scmp.ne.s32.totalorder %s1398_s19, %s1727_s20  ;;  %p1735_p11 = scmp.lt.s32.totalorder %s1727_s20, %s1727_s20 }
 0x4d1   : > { %p1729_p8 = pnand %p1728_p7, %p1646_p6  ;;  %p1736_p12 = por %p1735_p11, %p1734_p10 }
 0x4d3   : > { %p1730_p9 = pneg %p1729_p8 }
 0x4d5   : > { %p1737_p13 = pnand %p1736_p12, %p1730_p9 }
 0x4d7   : > { %1740 = shalt.err (!%p1737_p13)
}
 0x4d8   : > { %s1770_s21 = smov 128   ;;  %s1771_s22 = smov 8  }
 0x4d9   : > { %1643 = dma.vmem_to_hbm [thread:$0]  (%p1646_p6), %s1398_s19, 512, %s2103_s11, [#allocation5], %s1770_s21, %s1770_s21, %s1771_s22  }
 0x4da   : > { %1756 = dma.done.wait (%p1646_p6), [#allocation5], 512  }
 0x4db   : > { %1758 = vsyncadd (%p1646_p6), [#allocation5], 4294966784 }
 0x4dc PF: > { %s22_s17 = sadd.s32 1, %s1761_s17  }
 0x4dd   : > { %p19_p0 = scmp.ge.s32.totalorder %s22_s17, 6  }
 0x4df   :  { %21 = sbr.rel (!%p19_p0) target bundleno = 1 (0x1), region = 102 }
 0x4e4   :  { %1413 = vsyncpa [#allocation5], 1 }
 0x4e5   :  { %1415 = vsyncpa [#allocation5 + $0x1], 1 }

</bundles_post_ra>
